<compile_context>
chip_gen: v7x
topology: tpu7x:2x2x1
jax: 0.10.0
libtpu: 0.0.40
codegen_flags: <defaults>
</compile_context>

<pallas_src>
import functools

import jax
import jax.numpy as jnp
from jax.experimental import pallas as pl
from jax.experimental.pallas import tpu as pltpu


# ---------------------------------------------------------------------------
# Kernels
# ---------------------------------------------------------------------------
def _revin_norm_kernel(x_ref, w_ref, b_ref, y_ref, mean_ref, std_ref, *,
                       eps, affine):
    """One batch instance per grid step: x_ref block is (1, T, C)."""
    x = x_ref[0].astype(jnp.float32)                       # (T, C)
    inv_t = 1.0 / x.shape[0]

    mean = jnp.sum(x, axis=0, keepdims=True) * inv_t       # (1, C)
    xc = x - mean
    var = jnp.sum(xc * xc, axis=0, keepdims=True) * inv_t  # unbiased=False (biased)
    std = jnp.sqrt(var + eps)                              # (1, C)

    y = xc / std
    if affine:
        y = y * w_ref[...] + b_ref[...]                    # broadcast (1,C) over (T,C)

    y_ref[0] = y.astype(y_ref.dtype)
    mean_ref[0] = mean
    std_ref[0] = std


def _revin_denorm_kernel(x_ref, mean_ref, std_ref, w_ref, b_ref, y_ref, *,
                         eps, affine):
    x = x_ref[0].astype(jnp.float32)                       # (T, C)
    if affine:
        x = (x - b_ref[...]) / (w_ref[...] + eps * eps)
    y = x * std_ref[0] + mean_ref[0]
    y_ref[0] = y.astype(y_ref.dtype)


# ---------------------------------------------------------------------------
# pallas_call wrappers
# ---------------------------------------------------------------------------
def revin_norm(x, affine_weight, affine_bias, *, eps=1e-5, affine=True):
    """Returns (y, mean, stdev) with PyTorch keepdim shapes."""
    orig_shape = x.shape
    B, C = x.shape[0], x.shape[-1]
    x3 = x.reshape(B, -1, C)               # collapse all middle dims (dim2reduce)
    T = x3.shape[1]

    kernel = functools.partial(_revin_norm_kernel, eps=float(eps), affine=affine)
    y, mean, std = pl.pallas_call(
        kernel,
        out_shape=(
            jax.ShapeDtypeStruct((B, T, C), x.dtype),
            jax.ShapeDtypeStruct((B, 1, C), jnp.float32),
            jax.ShapeDtypeStruct((B, 1, C), jnp.float32),
        ),
        grid=(B,),
        in_specs=[
            pl.BlockSpec((1, T, C), lambda i: (i, 0, 0)),
            pl.BlockSpec((1, C), lambda i: (0, 0)),
            pl.BlockSpec((1, C), lambda i: (0, 0)),
        ],
        out_specs=(
            pl.BlockSpec((1, T, C), lambda i: (i, 0, 0)),
            pl.BlockSpec((1, 1, C), lambda i: (i, 0, 0)),
            pl.BlockSpec((1, 1, C), lambda i: (i, 0, 0)),
        ),
        compiler_params=pltpu.CompilerParams(dimension_semantics=("parallel",)),
    )(x3, affine_weight, affine_bias)

    keep_shape = (B,) + (1,) * (len(orig_shape) - 2) + (C,)
    return y.reshape(orig_shape), mean.reshape(keep_shape), std.reshape(keep_shape)


def revin_denorm(x, mean, stdev, affine_weight, affine_bias, *,
                 eps=1e-5, affine=True):
    orig_shape = x.shape
    B, C = x.shape[0], x.shape[-1]
    x3 = x.reshape(B, -1, C)
    T = x3.shape[1]
    mean3 = mean.reshape(B, 1, C)
    std3 = stdev.reshape(B, 1, C)

    kernel = functools.partial(_revin_denorm_kernel, eps=float(eps), affine=affine)
    y = pl.pallas_call(
        kernel,
        out_shape=jax.ShapeDtypeStruct((B, T, C), x.dtype),
        grid=(B,),
        in_specs=[
            pl.BlockSpec((1, T, C), lambda i: (i, 0, 0)),
            pl.BlockSpec((1, 1, C), lambda i: (i, 0, 0)),
            pl.BlockSpec((1, 1, C), lambda i: (i, 0, 0)),
            pl.BlockSpec((1, C), lambda i: (0, 0)),
            pl.BlockSpec((1, C), lambda i: (0, 0)),
        ],
        out_specs=pl.BlockSpec((1, T, C), lambda i: (i, 0, 0)),
        compiler_params=pltpu.CompilerParams(dimension_semantics=("parallel",)),
    )(x3, mean3, std3, affine_weight, affine_bias)
    return y.reshape(orig_shape)


# ---------------------------------------------------------------------------
# Module-like wrapper (mirrors the stateful PyTorch RevIN.forward(x, mode))
# ---------------------------------------------------------------------------
class RevIN:
    def __init__(self, num_features: int, eps=1e-5, affine=True):
        self.num_features = num_features
        self.eps = float(eps)
        self.affine = affine
        # PyTorch default init: weight=ones, bias=zeros (plain buffers).
        self.affine_weight = jnp.ones((1, num_features), jnp.float32)
        self.affine_bias = jnp.zeros((1, num_features), jnp.float32)
        self.mean = None
        self.stdev = None

    def __call__(self, x, mode: str):
        if mode == 'norm':
            y, self.mean, self.stdev = revin_norm(
                x, self.affine_weight, self.affine_bias,
                eps=self.eps, affine=self.affine)
            return y
        elif mode == 'denorm':
            if self.mean is None or self.stdev is None:
                raise RuntimeError("call with mode='norm' before 'denorm'")
            return revin_denorm(
                x, self.mean, self.stdev, self.affine_weight, self.affine_bias,
                eps=self.eps, affine=self.affine)
        raise NotImplementedError


# ---------------------------------------------------------------------------
# Self-test
# ---------------------------------------------------------------------------
if __name__ == "__main__":
    B, T, C = 4, 16, 32        # (batch, win_size, num_features)
    EPS = 1e-5

    key = jax.random.PRNGKey(0)
    kx, kw, kb = jax.random.split(key, 3)
    x = jax.random.normal(kx, (B, T, C), jnp.float32) * 3.0 + 1.5

    revin = RevIN(num_features=C, eps=EPS, affine=True)
    # Non-trivial affine buffers to exercise the affine path (the PyTorch module
    # stores these as plain tensors, so arbitrary values are legal).
    revin.affine_weight = 0.5 + jax.random.uniform(kw, (1, C), jnp.float32)
    revin.affine_bias = 0.1 * jax.random.normal(kb, (1, C), jnp.float32)

    y = revin(x, 'norm')
    x_rec = revin(y, 'denorm')
    jax.block_until_ready((y, x_rec, revin.mean, revin.stdev))

    # Pure-JAX reference (matches the PyTorch math).
    mean_ref = jnp.mean(x, axis=1, keepdims=True)
    std_ref = jnp.sqrt(jnp.var(x, axis=1, keepdims=True) + EPS)   # unbiased=False
    y_ref = (x - mean_ref) / std_ref * revin.affine_weight + revin.affine_bias
    x_rec_ref = ((y_ref - revin.affine_bias) / (revin.affine_weight + EPS * EPS)
                 ) * std_ref + mean_ref

    assert y.shape == x.shape
    assert revin.mean.shape == (B, 1, C) and revin.stdev.shape == (B, 1, C)
    assert bool(jnp.allclose(revin.mean, mean_ref, atol=1e-5, rtol=1e-5))
    assert bool(jnp.allclose(revin.stdev, std_ref, atol=1e-5, rtol=1e-5))
    assert bool(jnp.allclose(y, y_ref, atol=1e-5, rtol=1e-5))
    assert bool(jnp.allclose(x_rec, x_rec_ref, atol=1e-5, rtol=1e-5))
    # Round trip: denorm(norm(x)) reconstructs the input.
    assert bool(jnp.allclose(x_rec, x, atol=1e-3, rtol=1e-3))
    print("KERNEL_OK")
</pallas_src>

<mosaic_0001>
module attributes {stable_mosaic.version = 11 : i64} {
  func.func @_revin_norm_kernel(%arg0: i32, %arg1: memref<1x16x32xf32, #tpu.memory_space<vmem>>, %arg2: memref<1x32xf32, #tpu.memory_space<vmem>>, %arg3: memref<1x32xf32, #tpu.memory_space<vmem>>, %arg4: memref<1x16x32xf32, #tpu.memory_space<vmem>>, %arg5: memref<1x1x32xf32, #tpu.memory_space<vmem>>, %arg6: memref<1x1x32xf32, #tpu.memory_space<vmem>>) attributes {dimension_semantics = [#tpu.dimension_semantics<parallel>], iteration_bounds = array<i64: 4>, scalar_prefetch = 0 : i64, scratch_operands = 0 : i64, tpu.core_type = #tpu.core_type<tc>, window_params = [{transform_indices = @transform_0, window_bounds = array<i64: 1, 16, 32>}, {pipeline_mode = #tpu.pipeline_mode<synchronous>, transform_indices = @transform_1, window_bounds = array<i64: 1, 32>}, {pipeline_mode = #tpu.pipeline_mode<synchronous>, transform_indices = @transform_2, window_bounds = array<i64: 1, 32>}, {transform_indices = @transform_3, window_bounds = array<i64: 1, 16, 32>}, {transform_indices = @transform_4, window_bounds = array<i64: 1, 1, 32>}, {transform_indices = @transform_5, window_bounds = array<i64: 1, 1, 32>}]} {
    %c0 = arith.constant 0 : index
    %c0_0 = arith.constant 0 : index
    %c0_1 = arith.constant 0 : index
    %0 = vector.load %arg1[%c0, %c0_0, %c0_1] : memref<1x16x32xf32, #tpu.memory_space<vmem>>, vector<1x16x32xf32>
    %1 = vector.shape_cast %0 : vector<1x16x32xf32> to vector<16x32xf32>
    %cst = arith.constant dense<0.000000e+00> : vector<32xf32>
    %2 = vector.multi_reduction <add>, %1, %cst [0] : vector<16x32xf32> to vector<32xf32>
    %3 = vector.shape_cast %2 : vector<32xf32> to vector<1x32xf32>
    %cst_2 = arith.constant 6.250000e-02 : f32
    %4 = vector.broadcast %cst_2 : f32 to vector<1x32xf32>
    %5 = arith.mulf %3, %4 : vector<1x32xf32>
    %6 = vector.broadcast %5 : vector<1x32xf32> to vector<16x32xf32>
    %7 = arith.subf %1, %6 : vector<16x32xf32>
    %8 = arith.mulf %7, %7 : vector<16x32xf32>
    %cst_3 = arith.constant dense<0.000000e+00> : vector<32xf32>
    %9 = vector.multi_reduction <add>, %8, %cst_3 [0] : vector<16x32xf32> to vector<32xf32>
    %10 = vector.shape_cast %9 : vector<32xf32> to vector<1x32xf32>
    %cst_4 = arith.constant 6.250000e-02 : f32
    %11 = vector.broadcast %cst_4 : f32 to vector<1x32xf32>
    %12 = arith.mulf %10, %11 : vector<1x32xf32>
    %cst_5 = arith.constant 9.99999974E-6 : f32
    %13 = vector.broadcast %cst_5 : f32 to vector<1x32xf32>
    %14 = arith.addf %12, %13 : vector<1x32xf32>
    %15 = math.sqrt %14 : vector<1x32xf32>
    %16 = vector.broadcast %15 : vector<1x32xf32> to vector<16x32xf32>
    %17 = arith.divf %7, %16 : vector<16x32xf32>
    %c0_6 = arith.constant 0 : index
    %c0_7 = arith.constant 0 : index
    %18 = vector.load %arg2[%c0_6, %c0_7] : memref<1x32xf32, #tpu.memory_space<vmem>>, vector<1x32xf32>
    %19 = vector.broadcast %18 : vector<1x32xf32> to vector<16x32xf32>
    %20 = arith.mulf %17, %19 : vector<16x32xf32>
    %c0_8 = arith.constant 0 : index
    %c0_9 = arith.constant 0 : index
    %21 = vector.load %arg3[%c0_8, %c0_9] : memref<1x32xf32, #tpu.memory_space<vmem>>, vector<1x32xf32>
    %22 = vector.broadcast %21 : vector<1x32xf32> to vector<16x32xf32>
    %23 = arith.addf %20, %22 : vector<16x32xf32>
    %c0_10 = arith.constant 0 : index
    %c0_11 = arith.constant 0 : index
    %c0_12 = arith.constant 0 : index
    %24 = vector.load %arg4[%c0_10, %c0_11, %c0_12] : memref<1x16x32xf32, #tpu.memory_space<vmem>>, vector<1x16x32xf32>
    %25 = vector.shape_cast %24 : vector<1x16x32xf32> to vector<16x32xf32>
    %26 = vector.shape_cast %23 : vector<16x32xf32> to vector<1x16x32xf32>
    tpu.vector_store %arg4[%c0_10, %c0_11, %c0_12], %26 {strides = array<i32>} : memref<1x16x32xf32, #tpu.memory_space<vmem>>, vector<1x16x32xf32>,
    %c0_13 = arith.constant 0 : index
    %c0_14 = arith.constant 0 : index
    %c0_15 = arith.constant 0 : index
    %27 = vector.load %arg5[%c0_13, %c0_14, %c0_15] : memref<1x1x32xf32, #tpu.memory_space<vmem>>, vector<1x1x32xf32>
    %28 = vector.shape_cast %27 : vector<1x1x32xf32> to vector<1x32xf32>
    %29 = vector.shape_cast %5 : vector<1x32xf32> to vector<1x1x32xf32>
    tpu.vector_store %arg5[%c0_13, %c0_14, %c0_15], %29 {strides = array<i32>} : memref<1x1x32xf32, #tpu.memory_space<vmem>>, vector<1x1x32xf32>,
    %c0_16 = arith.constant 0 : index
    %c0_17 = arith.constant 0 : index
    %c0_18 = arith.constant 0 : index
    %30 = vector.load %arg6[%c0_16, %c0_17, %c0_18] : memref<1x1x32xf32, #tpu.memory_space<vmem>>, vector<1x1x32xf32>
    %31 = vector.shape_cast %30 : vector<1x1x32xf32> to vector<1x32xf32>
    %32 = vector.shape_cast %15 : vector<1x32xf32> to vector<1x1x32xf32>
    tpu.vector_store %arg6[%c0_16, %c0_17, %c0_18], %32 {strides = array<i32>} : memref<1x1x32xf32, #tpu.memory_space<vmem>>, vector<1x1x32xf32>,
    return
  }
  func.func @transform_0(%arg0: i32) -> (i32, i32, i32) {
    %c0_i32 = arith.constant 0 : i32
    %c0_i32_0 = arith.constant 0 : i32
    %c0_i32_1 = arith.constant 0 : i32
    return %arg0, %c0_i32, %c0_i32_0 : i32, i32, i32
  }
  func.func @transform_1(%arg0: i32) -> (i32, i32) {
    %c0_i32 = arith.constant 0 : i32
    %c0_i32_0 = arith.constant 0 : i32
    %c0_i32_1 = arith.constant 0 : i32
    return %c0_i32, %c0_i32_0 : i32, i32
  }
  func.func @transform_2(%arg0: i32) -> (i32, i32) {
    %c0_i32 = arith.constant 0 : i32
    %c0_i32_0 = arith.constant 0 : i32
    %c0_i32_1 = arith.constant 0 : i32
    return %c0_i32, %c0_i32_0 : i32, i32
  }
  func.func @transform_3(%arg0: i32) -> (i32, i32, i32) {
    %c0_i32 = arith.constant 0 : i32
    %c0_i32_0 = arith.constant 0 : i32
    %c0_i32_1 = arith.constant 0 : i32
    return %arg0, %c0_i32, %c0_i32_0 : i32, i32, i32
  }
  func.func @transform_4(%arg0: i32) -> (i32, i32, i32) {
    %c0_i32 = arith.constant 0 : i32
    %c0_i32_0 = arith.constant 0 : i32
    %c0_i32_1 = arith.constant 0 : i32
    return %arg0, %c0_i32, %c0_i32_0 : i32, i32, i32
  }
  func.func @transform_5(%arg0: i32) -> (i32, i32, i32) {
    %c0_i32 = arith.constant 0 : i32
    %c0_i32_0 = arith.constant 0 : i32
    %c0_i32_1 = arith.constant 0 : i32
    return %arg0, %c0_i32, %c0_i32_0 : i32, i32, i32
  }
}

</mosaic_0001>

<bundles_post_ra>
// kernel: tpu_custom_call.1
= control target key start
LH: loop header
LB: loop body
LE: loop exit
PB: predicated region body
PF: predicated region fallthrough
CT: control target
= control target key end

     0   :  { %11 = vsyncpa [#allocation3], 0  ;;  %s1034_s0 = inlined_call_operand.hbm [shape: f32[4,16,32], index: 0, kind: input, shape index: {}]   ;;  %s1035_s1 = inlined_call_operand.vmem [shape: f32[1,32], index: 1, kind: input, shape index: {}]   ;;  %s1036_s2 = inlined_call_operand.vmem [shape: f32[1,32], index: 2, kind: input, shape index: {}]   ;;  %s1037_s3 = inlined_call_operand.hbm [shape: f32[4,16,32], index: 3, kind: output, shape index: {0}]   ;;  %s1038_s4 = inlined_call_operand.hbm [shape: f32[4,1,32], index: 4, kind: output, shape index: {1}]   ;;  %s1039_s5 = inlined_call_operand.hbm [shape: f32[4,1,32], index: 5, kind: output, shape index: {2}]  }
   0x1   :  { %13 = vsyncpa [#allocation3 + $0x1], 0 }
   0x2   :  { %14 = vsyncpa [#allocation4], 0 }
   0x3   :  { %16 = vsyncpa [#allocation4 + $0x1], 0 }
   0x4   :  { %17 = vsyncpa [#allocation7], 0 }
   0x5   :  { %19 = vsyncpa [#allocation7 + $0x1], 0  ;;  %s774_s18 = smov 0   ;;  %s776_s19 = smov 0  }
   0x6   :  { %s778_s20 = smov 0   ;;  %s780_s21 = smov 0  }
   0x7 LB: > { %s795_s22 = sadd.s32 4294967295, %s734_s21   ;;  %s494_s23 = sadd.s32 4294967294, %s734_s21   ;;  %s734_s21 = sphi %s780_s21, %s1051_s21   ;;  %s730_s20 = sphi %s778_s20, %s1050_s20   ;;  %s726_s19 = sphi %s776_s19, %s1049_s19   ;;  %s722_s18 = sphi %s774_s18, %s1048_s18  }
   0x8   : > { %s799_s24 = sadd.s32 1, %s734_s21   ;;  %s32_s25 = sadd.s32 1, %s730_s20 }
   0x9   : > { %s29_s26 = ssub.s32 %s734_s21, %s799_s24  ;;  %p39_p0 = scmp.ne.s32.totalorder %s730_s20, %s726_s19 }
   0xa   : > { %p30_p1 = scmp.eq.s32.totalorder %s29_s26, 0  ;;  %p40_p2 = scmp.eq.s32.totalorder %s734_s21, 0 }
   0xb   : > { %p45_p3 = scmp.ne.s32.totalorder %s726_s19, %s722_s18  ;;  %p46_p4 = scmp.eq.s32.totalorder %s795_s22, 0 }
   0xc   : > { %s811_s27 = scalar_select %p30_p1, %s730_s20, %s32_s25  }
   0xd   : > { %p813_p5 = por %p40_p2, %p39_p0  ;;  %p817_p6 = por %p46_p4, %p45_p3 }
   0xe   : > { %p111_p7 = scmp.eq.s32.totalorder %s795_s22, 3  ;;  %p117_p8 = scmp.eq.s32.totalorder %s494_s23, 3 }
   0xf   : > { %p536_p9 = scmp.lt.s32.totalorder %s734_s21, 4  ;;  %s195_s7 = sand.u32 1, %s730_s20  }
  0x10   : > { %p825_p10 = por %p111_p7, %p39_p0  ;;  %p829_p11 = por %p117_p8, %p45_p3 }
  0x11   : > { %s512_s8 = sshll.u32 %s734_s21, 8  ;;  %s497_s9 = sshll.u32 %s195_s7, 4 }
  0x12   : > { %s1043_s30 = scalar_select %p825_p10, 1, 0 }
  0x13   : > { %s1044_s6 = scalar_select %p829_p11, 1, 0 }
  0x14   : > { %s838_s12 = scalar_lea.hbm %s1034_s0, %s512_s8  ;;  %s199_s13 = scalar_lea.vmem [#allocation2], %s497_s9 }
  0x15   : > { %s206_s14 = sshll.u32 %s199_s13, 4  ;;  %p842_p12 = pnand %p536_p9, %p813_p5  ;;  %s846_s14 = int_to_ptr.vmem [resolvable:$true] %s206_s14 }
  0x16   : > { %s848_s16 = scalar_lea.sflag [#allocation3], %s195_s7  ;;  %s578_s17 = scalar_lea.hbm %s838_s12, 256 }
  0x17   : > { %p579_p13 = scmp.ne.s32.totalorder %s838_s12, %s578_s17  ;;  %p580_p0 = pneg %p842_p12 }
  0x18   : > { %s583_s28 = scalar_lea.hbm %s1034_s0, 1024  ;;  %p584_p3 = scmp.lt.u32.totalorder %s838_s12, %s1034_s0 }
  0x19   : > { %p581_p1 = pnand %p580_p0, %p579_p13  ;;  %p585_p4 = scmp.lt.u32.totalorder %s583_s28, %s578_s17 }
  0x1a   : > { %p587_p7 = scmp.lt.u32.totalorder %s578_s17, %s838_s12 }
  0x1b   : > { %p582_p2 = pneg %p581_p1  ;;  %p586_p5 = por %p585_p4, %p584_p3 }
  0x1d   : > { %p588_p8 = por %p587_p7, %p586_p5 }
  0x1f   : > { %p589_p9 = pnand %p588_p8, %p582_p2 }
  0x21   : > { %592 = shalt.err (!%p589_p9)
}
  0x22   : > { %s593_s7 = scalar_lea.vmem %s846_s14, 256  ;;  %s736_s10 = smov [#allocation2]  }
  0x23   : > { %p594_p13 = scmp.ne.s32.totalorder %s846_s14, %s593_s7  ;;  %s598_s11 = sshll.u32 %s736_s10, 4  ;;  %s599_s11 = int_to_ptr.vmem [resolvable:$false] %s598_s11 }
  0x24   : > { %s600_s13 = scalar_lea.vmem %s599_s11, 512  ;;  %p601_p10 = scmp.lt.s32.totalorder %s846_s14, %s599_s11 }
  0x25   : > { %p596_p1 = pnand %p594_p13, %p580_p0  ;;  %p602_p3 = scmp.lt.s32.totalorder %s600_s13, %s593_s7 }
  0x27   : > { %p597_p11 = pneg %p596_p1  ;;  %p603_p4 = por %p602_p3, %p601_p10 }
  0x29   : > { %p604_p5 = pnand %p603_p4, %p597_p11 }
  0x2b   : > { %607 = shalt.err (!%p604_p5)
}
  0x2c   : > { %s737_s17 = smov 128   ;;  %s738_s25 = smov 8  }
  0x2d   : > { %525 = dma.hbm_to_vmem [thread:$0]  (!%p842_p12), %s838_s12, 256, %s846_s14, %s848_s16, %s737_s17, %s737_s17, %s738_s25  }
  0x2e   : > { %p500_p0 = scmp.ge.s32.totalorder %s734_s21, 1  ;;  %p214_p2 = scmp.lt.s32.totalorder %s734_s21, 5 }
  0x30   : > { %p215_p7 = pnand %p500_p0, %p214_p2 }
  0x31   : > { %s879_s26 = sand.u32 (!%p215_p7), 1, %s726_s19  }
  0x32   : > { %218 = sbr.rel (%p215_p7) target bundleno = 165 (0xa5), region = 32  ;;  %s501_s28 = sshll.u32 (!%p215_p7), %s879_s26, 4 }
  0x33   : > { %s221_s8 = scalar_lea.sflag (!%p215_p7), [#allocation3], %s879_s26  ;;  %s224_s9 = scalar_lea.vmem (!%p215_p7), [#allocation2], %s501_s28 }
  0x39   : > { %709 = dma.done.wait (%p817_p6), %s221_s8, 256  }
  0x3a   : > { %711 = vsyncadd (%p817_p6), %s221_s8, 4294967040  ;;  %vm261_vm0 = vcmask 261120   ;;  %v259_v0 = vld [vmem:[%s224_s9] sm:$0xff]  ;;  %v260_v1 = vld [vmem:[%s224_s9 + $0x8] sm:$0xff]  ;;  %s252_s29 = scalar_lea.vmem [#allocation6], %s879_s26  ;;  %s325_s14 = sand.u32 1, %s795_s22  }
  0x3b   : > { %v262_v2 = vsel %vm261_vm0, %v259_v0, 0.0  ;;  %v263_v3 = vsel %vm261_vm0, %v260_v1, 0.0  ;;  %s358_s12 = sshll.u32 %s252_s29, 4  ;;  %s508_s15 = sshll.u32 %s795_s22, 4  ;;  %vm317_vm1 = vcmask 253952   ;;  %s894_s12 = int_to_ptr.vmem [resolvable:$true] %s358_s12 }
  0x3c   : > { %v264_v4 = vadd.f32 %v263_v3, %v262_v2  ;;  %s901_s10 = scalar_lea.hbm %s1038_s4, %s508_s15  ;;  %s908_s11 = scalar_lea.sflag [#allocation7], %s325_s14 }
  0x3d   : > { %s608_s13 = scalar_lea.vmem %s894_s12, 16  ;;  %p1046_p10 = scmp.ne.s32.totalorder %s1043_s30, 0 }
  0x3e   : > { %v265_v5 = vrot.slane %v264_v4, 4  ;;  %p609_p6 = scmp.ne.s32.totalorder %s894_s12, %s608_s13  ;;  %s739_s17 = smov [#allocation6]  }
  0x3f   : > { %s612_s25 = sshll.u32 %s739_s17, 4  ;;  %s613_s25 = int_to_ptr.vmem [resolvable:$false] %s612_s25 }
  0x40   : > { %v266_v6 = vadd.f32 %v265_v5, %v264_v4  ;;  %p610_p11 = pnand %p609_p6, %p1046_p10  ;;  %s614_s8 = scalar_lea.vmem %s613_s25, 32 }
  0x41   : > { %p615_p8 = scmp.lt.s32.totalorder %s894_s12, %s613_s25  ;;  %p616_p9 = scmp.lt.s32.totalorder %s614_s8, %s608_s13 }
  0x42   : > { %v267_v7 = vrot.slane %v266_v6, 2  ;;  %p611_p12 = pneg %p610_p11 }
  0x43   : > { %p617_p13 = por %p616_p9, %p615_p8 }
  0x44   : > { %v268_v8 = vadd.f32 %v267_v7, %v266_v6 }
  0x45   : > { %p618_p1 = pnand %p617_p13, %p611_p12 }
  0x46   : > { %v269_v9 = vrot.slane %v268_v8, 1 }
  0x48   : > { %v270_v10 = vadd.f32 %v269_v9, %v268_v8 }
  0x4a   : > { %v271_v11 = vmul.f32 0.0625, %v270_v10 }
  0x4c   : > { %v903_v12 = vsub.f32 %v259_v0, %v271_v11  ;;  %v905_v13 = vsub.f32 %v260_v1, %v271_v11  ;;  %318 = vst.msk [vmem:[%s252_s29] sm:$0x1] %vm317_vm1, %v271_v11 }
  0x4d   : > { %621 = shalt.err (!%p618_p1)
}
  0x4e   : > { %s622_s9 = scalar_lea.hbm %s901_s10, 16  ;;  %s626_s16 = scalar_lea.hbm %s1038_s4, 64 }
  0x4f   : > { %p623_p3 = scmp.ne.s32.totalorder %s901_s10, %s622_s9  ;;  %p627_p0 = scmp.lt.u32.totalorder %s901_s10, %s1038_s4 }
  0x50   : > { %p628_p2 = scmp.lt.u32.totalorder %s626_s16, %s622_s9  ;;  %p630_p6 = scmp.lt.u32.totalorder %s622_s9, %s901_s10 }
  0x51   : > { %p624_p4 = pnand %p623_p3, %p1046_p10 }
  0x52   : > { %p629_p7 = por %p628_p2, %p627_p0 }
  0x53   : > { %p625_p5 = pneg %p624_p4 }
  0x54   : > { %p631_p11 = por %p630_p6, %p629_p7 }
  0x56   : > { %p632_p12 = pnand %p631_p11, %p625_p5 }
  0x58   : > { %635 = shalt.err (!%p632_p12)
}
  0x59   : > { %517 = dma.vmem_to_hbm [thread:$0]  (%p1046_p10), %s894_s12, 16, %s901_s10, %s908_s11   ;;  %v274_v14 = vmul.f32 %v903_v12, %v903_v12  ;;  %v275_v15 = vmul.f32 %v905_v13, %v905_v13 }
  0x5a   : > { %s258_s12 = scalar_lea.vmem [#allocation8], %s879_s26  ;;  %s946_s8 = scalar_lea.hbm %s1039_s5, %s508_s15 }
  0x5b   : > { %v276_v16 = vsel %vm261_vm0, %v274_v14, 0.0  ;;  %v277_v17 = vsel %vm261_vm0, %v275_v15, 0.0  ;;  %s371_s10 = sshll.u32 %s258_s12, 4  ;;  %s740_s29 = smov [#allocation8]   ;;  %s939_s10 = int_to_ptr.vmem [resolvable:$true] %s371_s10 }
  0x5c   : > { %v278_v18 = vadd.f32 %v277_v17, %v276_v16  ;;  %s636_s9 = scalar_lea.vmem %s939_s10, 16  ;;  %s640_s14 = sshll.u32 %s740_s29, 4  ;;  %s641_s14 = int_to_ptr.vmem [resolvable:$false] %s640_s14 }
  0x5d   : > { %p637_p8 = scmp.ne.s32.totalorder %s939_s10, %s636_s9  ;;  %s642_s16 = scalar_lea.vmem %s641_s14, 32 }
  0x5e   : > { %v279_v19 = vrot.slane %v278_v18, 4  ;;  %p643_p1 = scmp.lt.s32.totalorder %s939_s10, %s641_s14  ;;  %p644_p3 = scmp.lt.s32.totalorder %s642_s16, %s636_s9 }
  0x5f   : > { %p638_p9 = pnand %p637_p8, %p1046_p10 }
  0x60   : > { %v280_v20 = vadd.f32 %v279_v19, %v278_v18  ;;  %p645_p4 = por %p644_p3, %p643_p1 }
  0x61   : > { %p639_p13 = pneg %p638_p9 }
  0x62   : > { %v281_v21 = vrot.slane %v280_v20, 2 }
  0x63   : > { %p646_p5 = pnand %p645_p4, %p639_p13 }
  0x64   : > { %v282_v22 = vadd.f32 %v281_v21, %v280_v20 }
  0x66   : > { %v283_v23 = vrot.slane %v282_v22, 1 }
  0x68   : > { %v284_v24 = vadd.f32 %v283_v23, %v282_v22 }
  0x6a   : > { %v285_v25 = vmul.f32 0.0625, %v284_v24 }
  0x6c   : > { %v286_v26 = vadd.f32 1e-05, %v285_v25 }
  0x6e   : > { %574 = vrsqrt.f32 %v286_v26  ;;  %vm289_vm2 = vcmp.eq.f32.partialorder %v286_v26, inf  ;;  %v292_v28 = vand.u32 2147483648, %v286_v26  ;;  %vm291_vm3 = vcmp.eq.f32.partialorder %v286_v26, 0.0 }
  0x78   : > { %v575_v27 = vpop.eup %574 }
  0x79   : > { %v288_v29 = vmul.f32 %v575_v27, %v286_v26 }
  0x7b   : > { %v290_v30 = vsel %vm289_vm2, %v286_v26, %v288_v29 }
  0x7c   : > { %v293_v31 = vsel %vm291_vm3, %v292_v28, %v290_v30 }
  0x7d   : > { %576 = vrcp.f32 %v293_v31  ;;  %319 = vst.msk [vmem:[%s258_s12] sm:$0x1] %vm317_vm1, %v293_v31 }
  0x7e   : > { %649 = shalt.err (!%p646_p5)
}
  0x7f   : > { %s650_s15 = scalar_lea.hbm %s946_s8, 16  ;;  %s654_s12 = scalar_lea.hbm %s1039_s5, 64 }
  0x80   : > { %p651_p0 = scmp.ne.s32.totalorder %s946_s8, %s650_s15  ;;  %p655_p6 = scmp.lt.u32.totalorder %s946_s8, %s1039_s5 }
  0x81   : > { %p656_p11 = scmp.lt.u32.totalorder %s654_s12, %s650_s15  ;;  %p658_p8 = scmp.lt.u32.totalorder %s650_s15, %s946_s8 }
  0x82   : > { %p652_p2 = pnand %p651_p0, %p1046_p10 }
  0x83   : > { %p657_p12 = por %p656_p11, %p655_p6 }
  0x84   : > { %p653_p7 = pneg %p652_p2 }
  0x85   : > { %p659_p9 = por %p658_p8, %p657_p12 }
  0x87   : > { %p660_p13 = pnand %p659_p9, %p653_p7 }
  0x89   : > { %663 = shalt.err (!%p660_p13)
}
  0x8a   : > { %518 = dma.vmem_to_hbm [thread:$0]  (%p1046_p10), %s939_s10, 16, %s946_s8, %s908_s11   ;;  %v577_v32 = vpop.eup %576  ;;  %v503_v33 = vld [vmem:[%s1035_s1] ss:$0 sm:$0xff] }
  0x8b   : > { %s246_s14 = scalar_lea.vmem [#allocation5], %s501_s28  ;;  %v295_v34 = vmul.f32 %v577_v32, %v903_v12  ;;  %v296_v35 = vmul.f32 %v577_v32, %v905_v13  ;;  %s513_s15 = sshll.u32 %s795_s22, 8  ;;  %v504_v36 = vld [vmem:[%s1036_s2] ss:$0 sm:$0xff] }
  0x8c   : > { %s342_s16 = sshll.u32 %s246_s14, 4  ;;  %s987_s10 = scalar_lea.hbm %s1037_s3, %s513_s15  ;;  %s982_s16 = int_to_ptr.vmem [resolvable:$true] %s342_s16 }
  0x8d   : > { %v304_v37 = vmul.f32 %v503_v33, %v295_v34  ;;  %v305_v38 = vmul.f32 %v503_v33, %v296_v35  ;;  %s321_s22 = scalar_lea.sflag [#allocation4], %s879_s26  ;;  %s664_s8 = scalar_lea.vmem %s982_s16, 256 }
  0x8e   : > { %p665_p1 = scmp.ne.s32.totalorder %s982_s16, %s664_s8  ;;  %s741_s12 = smov [#allocation5]  }
  0x8f   : > { %v313_v39 = vadd.f32 %v504_v36, %v304_v37  ;;  %v314_v40 = vadd.f32 %v504_v36, %v305_v38  ;;  %s668_s13 = sshll.u32 %s741_s12, 4  ;;  %s669_s13 = int_to_ptr.vmem [resolvable:$false] %s668_s13 }
  0x90   : > { %p666_p3 = pnand %p665_p1, %p1046_p10  ;;  %s670_s25 = scalar_lea.vmem %s669_s13, 512 }
  0x91   : > { %315 = vst.msk [vmem:[%s246_s14] sm:$0xff] %vm261_vm0, %v313_v39  ;;  %316 = vst.msk [vmem:[%s246_s14 + $0x8] sm:$0xff] %vm261_vm0, %v314_v40  ;;  %p671_p5 = scmp.lt.s32.totalorder %s982_s16, %s669_s13  ;;  %p672_p0 = scmp.lt.s32.totalorder %s670_s25, %s664_s8 }
  0x92   : > { %p667_p4 = pneg %p666_p3 }
  0x93   : > { %p673_p2 = por %p672_p0, %p671_p5 }
  0x95   : > { %p674_p7 = pnand %p673_p2, %p667_p4 }
  0x97   : > { %677 = shalt.err (!%p674_p7)
}
  0x98   : > { %s678_s9 = scalar_lea.hbm %s987_s10, 256  ;;  %s682_s15 = scalar_lea.hbm %s1037_s3, 1024 }
  0x99   : > { %p679_p6 = scmp.ne.s32.totalorder %s987_s10, %s678_s9  ;;  %p683_p8 = scmp.lt.u32.totalorder %s987_s10, %s1037_s3 }
  0x9a   : > { %p684_p9 = scmp.lt.u32.totalorder %s682_s15, %s678_s9  ;;  %p686_p1 = scmp.lt.u32.totalorder %s678_s9, %s987_s10 }
  0x9b   : > { %p680_p11 = pnand %p679_p6, %p1046_p10 }
  0x9c   : > { %p685_p13 = por %p684_p9, %p683_p8 }
  0x9d   : > { %p681_p12 = pneg %p680_p11 }
  0x9e   : > { %p687_p3 = por %p686_p1, %p685_p13 }
  0xa0   : > { %p688_p4 = pnand %p687_p3, %p681_p12 }
  0xa2   : > { %691 = shalt.err (!%p688_p4)
}
  0xa3   : > { %s742_s11 = smov 128   ;;  %s743_s28 = smov 8  }
  0xa4   : > { %516 = dma.vmem_to_hbm [thread:$0]  (%p1046_p10), %s982_s16, 256, %s987_s10, %s321_s22, %s742_s11, %s742_s11, %s743_s28  }
  0xa5 PF: > { %p537_p5 = scmp.ge.s32.totalorder %s734_s21, 2  ;;  %s383_s8 = sand.u32 1, %s722_s18  }
  0xa6   : > { %p1047_p0 = scmp.ne.s32.totalorder %s1044_s6, 0  ;;  %s384_s12 = scalar_lea.sflag [#allocation4], %s383_s8 }
  0xa8   : > { %p527_p2 = pnand %p537_p5, %p1047_p0 }
  0xaa   : > { %713 = dma.done.wait (!%p527_p2), %s384_s12, 256  }
  0xab   : > { %715 = vsyncadd (!%p527_p2), %s384_s12, 4294967040  ;;  %s392_s13 = sand.u32 1, %s494_s23  }
  0xac   : > { %s393_s25 = scalar_lea.sflag [#allocation7], %s392_s13 }
  0xad   : > { %717 = dma.done.wait (!%p527_p2), %s393_s25, 32  }
  0xae   : > { %719 = vsyncadd (!%p527_p2), %s393_s25, 4294967264  ;;  %p22_p10 = scmp.ge.s32.totalorder %s799_s24, 6   ;;  %s1048_s18 = smov %s726_s19 }
  0xaf   : > { %s1049_s19 = smov %s730_s20  ;;  %s1050_s20 = smov %s811_s27 }
  0xb0   : > { %s1051_s21 = smov %s799_s24  ;;  %24 = sbr.rel (!%p22_p10) target bundleno = 7 (0x7), region = 109 }
  0xb7   :  { %405 = vsyncpa [#allocation3], 1 }
  0xb8   :  { %407 = vsyncpa [#allocation3 + $0x1], 1 }
  0xb9   :  { %408 = vsyncpa [#allocation4], 1 }
  0xba   :  { %410 = vsyncpa [#allocation4 + $0x1], 1 }
  0xbb   :  { %411 = vsyncpa [#allocation7], 1 }
  0xbc   :  { %413 = vsyncpa [#allocation7 + $0x1], 1 }

</bundles_post_ra>
